<compile_context>
chip_gen: v7x
topology: tpu7x:2x2x1
jax: 0.10.0
libtpu: 0.0.40
codegen_flags: <defaults>
</compile_context>

<pallas_src>
import jax
import jax.numpy as jnp
from jax.experimental import pallas as pl
from jax.experimental.pallas import tpu as pltpu


NUM_CLASSES = 10
OUT_PAD = 128          # lane-dense padded output width
TB_MAX = 512           # max batch tile (review: 256-512 reaches ~85% of HBM roofline)


def _round_up(x, m):
    return -(-x // m) * m


def _choose_tb(batch):
    """Batch-tile rows: sublane-aligned, <=512, >=2 grid steps for big batches."""
    if batch <= 128:
        return _round_up(batch, 8)                    # single small tile, no waste
    # keep at least 2 grid steps (v7x megacore), cap tile at TB_MAX rows
    return min(TB_MAX, _round_up(_round_up(batch, 2) // 2, 128))


def mlp_kernel(x_ref,
               w1_ref, b1_ref,
               w2_ref, b2_ref,
               w3_ref, b3_ref,
               w4_ref, b4_ref,
               w5_ref, b5_ref,
               o_ref):
    # Layer 1: Linear(in, 512) + ReLU   (dropout = identity in eval)
    h = jnp.dot(x_ref[...].astype(jnp.bfloat16), w1_ref[...],
                preferred_element_type=jnp.float32)
    h = jnp.maximum(h + b1_ref[...], 0.0)
    # Layer 2: Linear(512, 256) + ReLU
    h = jnp.dot(h.astype(jnp.bfloat16), w2_ref[...],
                preferred_element_type=jnp.float32)
    h = jnp.maximum(h + b2_ref[...], 0.0)
    # Layer 3: Linear(256, 128) + ReLU
    h = jnp.dot(h.astype(jnp.bfloat16), w3_ref[...],
                preferred_element_type=jnp.float32)
    h = jnp.maximum(h + b3_ref[...], 0.0)
    # Layer 4: Linear(128, 64) + ReLU
    h = jnp.dot(h.astype(jnp.bfloat16), w4_ref[...],
                preferred_element_type=jnp.float32)
    h = jnp.maximum(h + b4_ref[...], 0.0)
    # Layer 5: Linear(64, num_classes) padded to OUT_PAD lanes.
    # w5 pad columns are 0 and b5 pad lanes are -1e30, so padded logits are
    # ~-1e30 and vanish in the softmax (no explicit mask needed).
    logits = jnp.dot(h.astype(jnp.bfloat16), w5_ref[...],
                     preferred_element_type=jnp.float32) + b5_ref[...]
    # Softmax over dim=1 (numerically stable, exact f32 normalization)
    m = jnp.max(logits, axis=1, keepdims=True)
    e = jnp.exp(logits - m)
    denom = jnp.sum(e, axis=1, keepdims=True)
    o_ref[...] = (e / denom).astype(o_ref.dtype)


def mlp_base_forward(x, params):
    """x: (B, H, W) float32. Returns softmax probabilities (B, NUM_CLASSES)."""
    B = x.shape[0]
    flat = x.reshape(B, -1)  # nn.Flatten()
    in_features = flat.shape[1]

    tb = _choose_tb(B)
    grid = (pl.cdiv(B, tb),)

    (w1, b1), (w2, b2), (w3, b3), (w4, b4), (w5, b5) = params
    args = [flat, w1, b1, w2, b2, w3, b3, w4, b4, w5, b5]

    def resident(a):
        # Full-array block, same block index every grid step -> DMA'd once.
        return pl.BlockSpec(a.shape, lambda i: (0, 0))

    in_specs = [pl.BlockSpec((tb, in_features), lambda i: (i, 0))]
    in_specs += [resident(a) for a in args[1:]]

    out = pl.pallas_call(
        mlp_kernel,
        out_shape=jax.ShapeDtypeStruct((B, OUT_PAD), jnp.float32),
        grid=grid,
        in_specs=in_specs,
        out_specs=pl.BlockSpec((tb, OUT_PAD), lambda i: (i, 0)),
        compiler_params=pltpu.CompilerParams(
            dimension_semantics=("parallel",)),
    )(*args)

    return out[:, :NUM_CLASSES]


def init_params(key, in_features):
    """Deterministic params matching PyTorch Linear shapes.

    Weights are stored transposed, i.e. (in, out), in bfloat16 (native MXU
    path); biases stay f32 as (1, out). The final layer is padded to OUT_PAD
    lanes at init: zero weight columns and -1e30 bias lanes bake the softmax
    pad-mask into the data (no per-call padding, no in-kernel mask).
    """
    dims = [in_features, 512, 256, 128, 64, NUM_CLASSES]
    params = []
    for i in range(len(dims) - 1):
        fan_in, fan_out = dims[i], dims[i + 1]
        key, kw, kb = jax.random.split(key, 3)
        bound = 1.0 / (fan_in ** 0.5)  # PyTorch default Linear init range
        w = jax.random.uniform(kw, (fan_in, fan_out), jnp.float32,
                               minval=-bound, maxval=bound)
        b = jax.random.uniform(kb, (1, fan_out), jnp.float32,
                               minval=-bound, maxval=bound)
        if i == len(dims) - 2:  # final layer -> lane-dense padding at init
            w = jnp.pad(w, ((0, 0), (0, OUT_PAD - fan_out)))
            b = jnp.pad(b, ((0, 0), (0, OUT_PAD - fan_out)),
                        constant_values=-1e30)
        params.append((w.astype(jnp.bfloat16), b))
    return params


if __name__ == "__main__":
    key = jax.random.PRNGKey(0)
    input_shape = (16, 16)          # self.input_shape
    batch = 8

    key, kx = jax.random.split(key)
    x = jax.random.normal(kx, (batch,) + input_shape, jnp.float32)

    params = init_params(key, input_shape[0] * input_shape[1])

    probs = mlp_base_forward(x, params)
    probs = jax.block_until_ready(probs)

    # sanity: rows of a softmax sum to 1 (exact f32 normalization in-kernel)
    assert probs.shape == (batch, NUM_CLASSES)
    assert jnp.allclose(jnp.sum(probs, axis=1), 1.0, atol=1e-3)
    assert bool(jnp.all(jnp.isfinite(probs)))

    print("KERNEL_OK")
</pallas_src>

<mosaic_0001>
module attributes {stable_mosaic.version = 11 : i64} {
  func.func @mlp_kernel(%arg0: i32, %arg1: memref<8x256xf32, #tpu.memory_space<vmem>>, %arg2: memref<256x512xbf16, #tpu.memory_space<vmem>>, %arg3: memref<1x512xf32, #tpu.memory_space<vmem>>, %arg4: memref<512x256xbf16, #tpu.memory_space<vmem>>, %arg5: memref<1x256xf32, #tpu.memory_space<vmem>>, %arg6: memref<256x128xbf16, #tpu.memory_space<vmem>>, %arg7: memref<1x128xf32, #tpu.memory_space<vmem>>, %arg8: memref<128x64xbf16, #tpu.memory_space<vmem>>, %arg9: memref<1x64xf32, #tpu.memory_space<vmem>>, %arg10: memref<64x128xbf16, #tpu.memory_space<vmem>>, %arg11: memref<1x128xf32, #tpu.memory_space<vmem>>, %arg12: memref<8x128xf32, #tpu.memory_space<vmem>>) attributes {dimension_semantics = [#tpu.dimension_semantics<parallel>], iteration_bounds = array<i64: 1>, scalar_prefetch = 0 : i64, scratch_operands = 0 : i64, tpu.core_type = #tpu.core_type<tc>, window_params = [{transform_indices = @transform_0, window_bounds = array<i64: 8, 256>}, {pipeline_mode = #tpu.pipeline_mode<synchronous>, transform_indices = @transform_1, window_bounds = array<i64: 256, 512>}, {pipeline_mode = #tpu.pipeline_mode<synchronous>, transform_indices = @transform_2, window_bounds = array<i64: 1, 512>}, {pipeline_mode = #tpu.pipeline_mode<synchronous>, transform_indices = @transform_3, window_bounds = array<i64: 512, 256>}, {pipeline_mode = #tpu.pipeline_mode<synchronous>, transform_indices = @transform_4, window_bounds = array<i64: 1, 256>}, {pipeline_mode = #tpu.pipeline_mode<synchronous>, transform_indices = @transform_5, window_bounds = array<i64: 256, 128>}, {pipeline_mode = #tpu.pipeline_mode<synchronous>, transform_indices = @transform_6, window_bounds = array<i64: 1, 128>}, {pipeline_mode = #tpu.pipeline_mode<synchronous>, transform_indices = @transform_7, window_bounds = array<i64: 128, 64>}, {pipeline_mode = #tpu.pipeline_mode<synchronous>, transform_indices = @transform_8, window_bounds = array<i64: 1, 64>}, {pipeline_mode = #tpu.pipeline_mode<synchronous>, transform_indices = @transform_9, window_bounds = array<i64: 64, 128>}, {pipeline_mode = #tpu.pipeline_mode<synchronous>, transform_indices = @transform_10, window_bounds = array<i64: 1, 128>}, {transform_indices = @transform_11, window_bounds = array<i64: 8, 128>}]} {
    %c0 = arith.constant 0 : index
    %c0_0 = arith.constant 0 : index
    %0 = vector.load %arg1[%c0, %c0_0] : memref<8x256xf32, #tpu.memory_space<vmem>>, vector<8x256xf32>
    %1 = arith.truncf %0 : vector<8x256xf32> to vector<8x256xbf16>
    %c0_1 = arith.constant 0 : index
    %c0_2 = arith.constant 0 : index
    %2 = vector.load %arg2[%c0_1, %c0_2] : memref<256x512xbf16, #tpu.memory_space<vmem>>, vector<256x512xbf16>
    %cst = arith.constant dense<0.000000e+00> : vector<8x512xf32>
    %3 = tpu.matmul %1, %2, %cst {dimension_numbers = #tpu.dot_dimension_numbers<[1], [0], [0], [1], [0, 0, 1, 1], [], []>} : vector<8x256xbf16>, vector<256x512xbf16>, vector<8x512xf32> -> vector<8x512xf32>
    %c0_3 = arith.constant 0 : index
    %c0_4 = arith.constant 0 : index
    %4 = vector.load %arg3[%c0_3, %c0_4] : memref<1x512xf32, #tpu.memory_space<vmem>>, vector<1x512xf32>
    %5 = vector.broadcast %4 : vector<1x512xf32> to vector<8x512xf32>
    %6 = arith.addf %3, %5 : vector<8x512xf32>
    %cst_5 = arith.constant 0.000000e+00 : f32
    %7 = vector.broadcast %cst_5 : f32 to vector<8x512xf32>
    %8 = arith.maximumf %6, %7 : vector<8x512xf32>
    %9 = arith.truncf %8 : vector<8x512xf32> to vector<8x512xbf16>
    %c0_6 = arith.constant 0 : index
    %c0_7 = arith.constant 0 : index
    %10 = vector.load %arg4[%c0_6, %c0_7] : memref<512x256xbf16, #tpu.memory_space<vmem>>, vector<512x256xbf16>
    %cst_8 = arith.constant dense<0.000000e+00> : vector<8x256xf32>
    %11 = tpu.matmul %9, %10, %cst_8 {dimension_numbers = #tpu.dot_dimension_numbers<[1], [0], [0], [1], [0, 0, 1, 1], [], []>} : vector<8x512xbf16>, vector<512x256xbf16>, vector<8x256xf32> -> vector<8x256xf32>
    %c0_9 = arith.constant 0 : index
    %c0_10 = arith.constant 0 : index
    %12 = vector.load %arg5[%c0_9, %c0_10] : memref<1x256xf32, #tpu.memory_space<vmem>>, vector<1x256xf32>
    %13 = vector.broadcast %12 : vector<1x256xf32> to vector<8x256xf32>
    %14 = arith.addf %11, %13 : vector<8x256xf32>
    %cst_11 = arith.constant 0.000000e+00 : f32
    %15 = vector.broadcast %cst_11 : f32 to vector<8x256xf32>
    %16 = arith.maximumf %14, %15 : vector<8x256xf32>
    %17 = arith.truncf %16 : vector<8x256xf32> to vector<8x256xbf16>
    %c0_12 = arith.constant 0 : index
    %c0_13 = arith.constant 0 : index
    %18 = vector.load %arg6[%c0_12, %c0_13] : memref<256x128xbf16, #tpu.memory_space<vmem>>, vector<256x128xbf16>
    %cst_14 = arith.constant dense<0.000000e+00> : vector<8x128xf32>
    %19 = tpu.matmul %17, %18, %cst_14 {dimension_numbers = #tpu.dot_dimension_numbers<[1], [0], [0], [1], [0, 0, 1, 1], [], []>} : vector<8x256xbf16>, vector<256x128xbf16>, vector<8x128xf32> -> vector<8x128xf32>
    %c0_15 = arith.constant 0 : index
    %c0_16 = arith.constant 0 : index
    %20 = vector.load %arg7[%c0_15, %c0_16] : memref<1x128xf32, #tpu.memory_space<vmem>>, vector<1x128xf32>
    %21 = vector.broadcast %20 : vector<1x128xf32> to vector<8x128xf32>
    %22 = arith.addf %19, %21 : vector<8x128xf32>
    %cst_17 = arith.constant 0.000000e+00 : f32
    %23 = vector.broadcast %cst_17 : f32 to vector<8x128xf32>
    %24 = arith.maximumf %22, %23 : vector<8x128xf32>
    %25 = arith.truncf %24 : vector<8x128xf32> to vector<8x128xbf16>
    %c0_18 = arith.constant 0 : index
    %c0_19 = arith.constant 0 : index
    %26 = vector.load %arg8[%c0_18, %c0_19] : memref<128x64xbf16, #tpu.memory_space<vmem>>, vector<128x64xbf16>
    %cst_20 = arith.constant dense<0.000000e+00> : vector<8x64xf32>
    %27 = tpu.matmul %25, %26, %cst_20 {dimension_numbers = #tpu.dot_dimension_numbers<[1], [0], [0], [1], [0, 0, 1, 1], [], []>} : vector<8x128xbf16>, vector<128x64xbf16>, vector<8x64xf32> -> vector<8x64xf32>
    %c0_21 = arith.constant 0 : index
    %c0_22 = arith.constant 0 : index
    %28 = vector.load %arg9[%c0_21, %c0_22] : memref<1x64xf32, #tpu.memory_space<vmem>>, vector<1x64xf32>
    %29 = vector.broadcast %28 : vector<1x64xf32> to vector<8x64xf32>
    %30 = arith.addf %27, %29 : vector<8x64xf32>
    %cst_23 = arith.constant 0.000000e+00 : f32
    %31 = vector.broadcast %cst_23 : f32 to vector<8x64xf32>
    %32 = arith.maximumf %30, %31 : vector<8x64xf32>
    %33 = arith.truncf %32 : vector<8x64xf32> to vector<8x64xbf16>
    %c0_24 = arith.constant 0 : index
    %c0_25 = arith.constant 0 : index
    %34 = vector.load %arg10[%c0_24, %c0_25] : memref<64x128xbf16, #tpu.memory_space<vmem>>, vector<64x128xbf16>
    %cst_26 = arith.constant dense<0.000000e+00> : vector<8x128xf32>
    %35 = tpu.matmul %33, %34, %cst_26 {dimension_numbers = #tpu.dot_dimension_numbers<[1], [0], [0], [1], [0, 0, 1, 1], [], []>} : vector<8x64xbf16>, vector<64x128xbf16>, vector<8x128xf32> -> vector<8x128xf32>
    %c0_27 = arith.constant 0 : index
    %c0_28 = arith.constant 0 : index
    %36 = vector.load %arg11[%c0_27, %c0_28] : memref<1x128xf32, #tpu.memory_space<vmem>>, vector<1x128xf32>
    %37 = vector.broadcast %36 : vector<1x128xf32> to vector<8x128xf32>
    %38 = arith.addf %35, %37 : vector<8x128xf32>
    %cst_29 = arith.constant dense<0xFF800000> : vector<8xf32>
    %39 = vector.multi_reduction <maximumf>, %38, %cst_29 [1] : vector<8x128xf32> to vector<8xf32>
    %40 = vector.shape_cast %39 : vector<8xf32> to vector<8x1xf32>
    %41 = vector.broadcast %40 : vector<8x1xf32> to vector<8x128xf32>
    %42 = arith.subf %38, %41 : vector<8x128xf32>
    %43 = math.exp %42 : vector<8x128xf32>
    %cst_30 = arith.constant dense<0.000000e+00> : vector<8xf32>
    %44 = vector.multi_reduction <add>, %43, %cst_30 [1] : vector<8x128xf32> to vector<8xf32>
    %45 = vector.shape_cast %44 : vector<8xf32> to vector<8x1xf32>
    %46 = vector.broadcast %45 : vector<8x1xf32> to vector<8x128xf32>
    %47 = arith.divf %43, %46 : vector<8x128xf32>
    %c0_31 = arith.constant 0 : index
    %c0_32 = arith.constant 0 : index
    %48 = vector.load %arg12[%c0_31, %c0_32] : memref<8x128xf32, #tpu.memory_space<vmem>>, vector<8x128xf32>
    tpu.vector_store %arg12[%c0_31, %c0_32], %47 {strides = array<i32>} : memref<8x128xf32, #tpu.memory_space<vmem>>, vector<8x128xf32>,
    return
  }
  func.func @transform_0(%arg0: i32) -> (i32, i32) {
    %c0_i32 = arith.constant 0 : i32
    %c0_i32_0 = arith.constant 0 : i32
    return %arg0, %c0_i32 : i32, i32
  }
  func.func @transform_1(%arg0: i32) -> (i32, i32) {
    %c0_i32 = arith.constant 0 : i32
    %c0_i32_0 = arith.constant 0 : i32
    %c0_i32_1 = arith.constant 0 : i32
    return %c0_i32, %c0_i32_0 : i32, i32
  }
  func.func @transform_2(%arg0: i32) -> (i32, i32) {
    %c0_i32 = arith.constant 0 : i32
    %c0_i32_0 = arith.constant 0 : i32
    %c0_i32_1 = arith.constant 0 : i32
    return %c0_i32, %c0_i32_0 : i32, i32
  }
  func.func @transform_3(%arg0: i32) -> (i32, i32) {
    %c0_i32 = arith.constant 0 : i32
    %c0_i32_0 = arith.constant 0 : i32
    %c0_i32_1 = arith.constant 0 : i32
    return %c0_i32, %c0_i32_0 : i32, i32
  }
  func.func @transform_4(%arg0: i32) -> (i32, i32) {
    %c0_i32 = arith.constant 0 : i32
    %c0_i32_0 = arith.constant 0 : i32
    %c0_i32_1 = arith.constant 0 : i32
    return %c0_i32, %c0_i32_0 : i32, i32
  }
  func.func @transform_5(%arg0: i32) -> (i32, i32) {
    %c0_i32 = arith.constant 0 : i32
    %c0_i32_0 = arith.constant 0 : i32
    %c0_i32_1 = arith.constant 0 : i32
    return %c0_i32, %c0_i32_0 : i32, i32
  }
  func.func @transform_6(%arg0: i32) -> (i32, i32) {
    %c0_i32 = arith.constant 0 : i32
    %c0_i32_0 = arith.constant 0 : i32
    %c0_i32_1 = arith.constant 0 : i32
    return %c0_i32, %c0_i32_0 : i32, i32
  }
  func.func @transform_7(%arg0: i32) -> (i32, i32) {
    %c0_i32 = arith.constant 0 : i32
    %c0_i32_0 = arith.constant 0 : i32
    %c0_i32_1 = arith.constant 0 : i32
    return %c0_i32, %c0_i32_0 : i32, i32
  }
  func.func @transform_8(%arg0: i32) -> (i32, i32) {
    %c0_i32 = arith.constant 0 : i32
    %c0_i32_0 = arith.constant 0 : i32
    %c0_i32_1 = arith.constant 0 : i32
    return %c0_i32, %c0_i32_0 : i32, i32
  }
  func.func @transform_9(%arg0: i32) -> (i32, i32) {
    %c0_i32 = arith.constant 0 : i32
    %c0_i32_0 = arith.constant 0 : i32
    %c0_i32_1 = arith.constant 0 : i32
    return %c0_i32, %c0_i32_0 : i32, i32
  }
  func.func @transform_10(%arg0: i32) -> (i32, i32) {
    %c0_i32 = arith.constant 0 : i32
    %c0_i32_0 = arith.constant 0 : i32
    %c0_i32_1 = arith.constant 0 : i32
    return %c0_i32, %c0_i32_0 : i32, i32
  }
  func.func @transform_11(%arg0: i32) -> (i32, i32) {
    %c0_i32 = arith.constant 0 : i32
    %c0_i32_0 = arith.constant 0 : i32
    return %arg0, %c0_i32 : i32, i32
  }
}

</mosaic_0001>

<bundles_post_ra>
// kernel: tpu_custom_call.1
= control target key start
LH: loop header
LB: loop body
LE: loop exit
PB: predicated region body
PF: predicated region fallthrough
CT: control target
= control target key end

     0   :  { %16 = vsyncpa [#allocation3], 0  ;;  %s2223_s0 = inlined_call_operand.vmem [shape: f32[8,256], index: 0, kind: input, shape index: {}]   ;;  %s2224_s1 = inlined_call_operand.hbm [shape: bf16[256,512], index: 1, kind: input, shape index: {}]   ;;  %s2225_s2 = inlined_call_operand.vmem [shape: f32[1,512], index: 2, kind: input, shape index: {}]   ;;  %s2226_s3 = inlined_call_operand.hbm [shape: bf16[512,256], index: 3, kind: input, shape index: {}]   ;;  %s2227_s4 = inlined_call_operand.vmem [shape: f32[1,256], index: 4, kind: input, shape index: {}]   ;;  %s2228_s5 = inlined_call_operand.hbm [shape: bf16[256,128], index: 5, kind: input, shape index: {}]   ;;  %s2229_s6 = inlined_call_operand.vmem [shape: f32[1,128], index: 6, kind: input, shape index: {}]   ;;  %s2230_s7 = inlined_call_operand.vmem [shape: bf16[128,64], index: 7, kind: input, shape index: {}]   ;;  %s2231_s8 = inlined_call_operand.vmem [shape: f32[1,64], index: 8, kind: input, shape index: {}]   ;;  %s2232_s9 = inlined_call_operand.vmem [shape: bf16[64,128], index: 9, kind: input, shape index: {}]   ;;  %s2233_s10 = inlined_call_operand.vmem [shape: f32[1,128], index: 10, kind: input, shape index: {}]   ;;  %s2234_s11 = inlined_call_operand.hbm [shape: f32[8,128], index: 11, kind: output, shape index: {}]  }
   0x1   :  { %17 = vsyncpa [#allocation6], 0 }
   0x2   :  { %18 = vsyncpa [#allocation4], 0  ;;  %s2026_s17 = smov [#allocation5]   ;;  %s1932_s21 = scalar_lea.hbm %s2226_s3, 8192 }
   0x3   :  { %s40_s18 = sshll.u32 %s2026_s17, 4  ;;  %p1933_p0 = scmp.ne.s32.totalorder %s2226_s3, %s1932_s21  ;;  %s41_s18 = int_to_ptr.vmem [resolvable:$true] %s40_s18 }
   0x4   :  { %p1936_p1 = scmp.lt.u32.totalorder %s1932_s21, %s2226_s3 }
   0x6   :  { %p1938_p2 = pnand %p1936_p1, %p1933_p0 }
   0x8   :  { %1941 = shalt.err (!%p1938_p2)
}
   0x9   :  { %s1942_s26 = scalar_lea.vmem %s41_s18, 8192  ;;  %p1947_p4 = scmp.lt.s32.totalorder %s41_s18, %s41_s18 }
   0xa   :  { %p1943_p3 = scmp.ne.s32.totalorder %s41_s18, %s1942_s26  ;;  %p1948_p5 = scmp.lt.s32.totalorder %s1942_s26, %s1942_s26 }
   0xc   :  { %p1949_p6 = por %p1948_p5, %p1947_p4 }
   0xe   :  { %p1950_p7 = pnand %p1949_p6, %p1943_p3 }
  0x10   :  { %1953 = shalt.err (!%p1950_p7)
}
  0x11   :  { %s2027_s27 = smov 128   ;;  %s2028_s28 = smov 8  }
  0x12   :  { %46 = dma.hbm_to_vmem [thread:$0]  %s2226_s3, 8192, %s41_s18, [#allocation6], %s2027_s27, %s2027_s27, %s2028_s28  }
  0x13   :  { %s2029_s12 = smov [#allocation2]   ;;  %s1954_s16 = scalar_lea.hbm %s2224_s1, 8192 }
  0x14   :  { %s26_s13 = sshll.u32 %s2029_s12, 4  ;;  %p1955_p8 = scmp.ne.s32.totalorder %s2224_s1, %s1954_s16  ;;  %s27_s13 = int_to_ptr.vmem [resolvable:$true] %s26_s13 }
  0x15   :  { %p1958_p9 = scmp.lt.u32.totalorder %s1954_s16, %s2224_s1 }
  0x17   :  { %p1960_p10 = pnand %p1958_p9, %p1955_p8 }
  0x19   :  { %1963 = shalt.err (!%p1960_p10)
}
  0x1a   :  { %s1964_s22 = scalar_lea.vmem %s27_s13, 8192  ;;  %p1969_p12 = scmp.lt.s32.totalorder %s27_s13, %s27_s13 }
  0x1b   :  { %p1965_p11 = scmp.ne.s32.totalorder %s27_s13, %s1964_s22  ;;  %p1970_p13 = scmp.lt.s32.totalorder %s1964_s22, %s1964_s22 }
  0x1d   :  { %p1971_p0 = por %p1970_p13, %p1969_p12 }
  0x1f   :  { %p1972_p1 = pnand %p1971_p0, %p1965_p11 }
  0x21   :  { %1975 = shalt.err (!%p1972_p1)
}
  0x22   :  { %s2030_s3 = smov 256   ;;  %s2031_s18 = smov 16  }
  0x23   :  { %32 = dma.hbm_to_vmem [thread:$0]  %s2224_s1, 8192, %s27_s13, [#allocation3], %s2030_s3, %s2030_s3, %s2031_s18  }
  0x24   :  { %s2032_s25 = smov [#allocation7]   ;;  %s1976_s29 = scalar_lea.hbm %s2228_s5, 2048 }
  0x25   :  { %s54_s26 = sshll.u32 %s2032_s25, 4  ;;  %p1977_p2 = scmp.ne.s32.totalorder %s2228_s5, %s1976_s29  ;;  %s55_s26 = int_to_ptr.vmem [resolvable:$true] %s54_s26 }
  0x26   :  { %p1980_p3 = scmp.lt.u32.totalorder %s1976_s29, %s2228_s5 }
  0x28   :  { %p1982_p4 = pnand %p1980_p3, %p1977_p2 }
  0x2a   :  { %1985 = shalt.err (!%p1982_p4)
}
  0x2b   :  { %s1986_s16 = scalar_lea.vmem %s55_s26, 2048  ;;  %p1991_p6 = scmp.lt.s32.totalorder %s55_s26, %s55_s26 }
  0x2c   :  { %p1987_p5 = scmp.ne.s32.totalorder %s55_s26, %s1986_s16  ;;  %p1992_p7 = scmp.lt.s32.totalorder %s1986_s16, %s1986_s16 }
  0x2e   :  { %p1993_p8 = por %p1992_p7, %p1991_p6 }
  0x30   :  { %p1994_p9 = pnand %p1993_p8, %p1987_p5 }
  0x32   :  { %1997 = shalt.err (!%p1994_p9)
}
  0x33   :  { %s2033_s1 = smov 64   ;;  %s2034_s13 = smov 4  }
  0x34   :  { %60 = dma.hbm_to_vmem [thread:$0]  %s2228_s5, 2048, %s55_s26, [#allocation6], %s2033_s1, %s2033_s1, %s2034_s13  }
  0x35   :  { %2020 = dma.done.wait [#allocation3], 8192  }
  0x36   :  { %2021 = vsyncadd [#allocation3], 4294959104 }
  0x37   :  { %2022 = dma.done.wait [#allocation6], 10240  }
  0x38   :  { %2023 = vsyncadd [#allocation6], 4294957056  ;;  %v1708_v0 = vld [vmem:[#allocation2 + $0x4] ss:$16 sps:$4 sm:$0xff]   ;;  %v1710_v1 = vld [vmem:[#allocation2] ss:$16 sps:$4 sm:$0xff]  }
  0x39   :  { %491 = vmatprep.subr.bf16.mxu0 %v1708_v0  ;;  %v1711_v2 = vld [vmem:[#allocation2 + $0x24] ss:$16 sps:$4 sm:$0xff]   ;;  %v1713_v3 = vld [vmem:[#allocation2 + $0x20] ss:$16 sps:$4 sm:$0xff]   ;;  %v1755_v13 = vld [vmem:[#allocation2 + $0xc] ss:$16 sps:$4 sm:$0xff]  }
  0x3a   :  { %492 = vmatpush1.bf16.msra.mxu0 %v1710_v1  ;;  %v1714_v4 = vld [vmem:[#allocation2 + $0x44] ss:$16 sps:$4 sm:$0xff]   ;;  %v1716_v5 = vld [vmem:[#allocation2 + $0x40] ss:$16 sps:$4 sm:$0xff]   ;;  %v1758_v15 = vld [vmem:[#allocation2 + $0x8] ss:$16 sps:$4 sm:$0xff]   ;;  %532 = vmatprep.subr.bf16.mxu1 %v1755_v13 }
  0x3b   :  { %493 = vmatprep.subr.bf16.mxu0 %v1711_v2  ;;  %v1717_v6 = vld [vmem:[#allocation2 + $0x64] ss:$16 sps:$4 sm:$0xff]   ;;  %v1719_v7 = vld [vmem:[#allocation2 + $0x60] ss:$16 sps:$4 sm:$0xff]   ;;  %v82_v16 = vld [vmem:[%s2223_s0 + $0x8] sm:$0xff]  ;;  %533 = vmatpush1.bf16.msra.mxu1 %v1758_v15  ;;  %vm2036_vm0 = vmmov 0  }
  0x3c   :  { %v1720_v8 = vld [vmem:[#allocation2 + $0x84] ss:$16 sps:$4 sm:$0xff]   ;;  %v1722_v9 = vld [vmem:[#allocation2 + $0x80] ss:$16 sps:$4 sm:$0xff]   ;;  %v84_v18 = vpack.c.bf16 %v82_v16, %v82_v16  ;;  %v1759_v19 = vld [vmem:[#allocation2 + $0x2c] ss:$16 sps:$4 sm:$0xff]  }
  0x3d   :  { %v1723_v10 = vld [vmem:[#allocation2 + $0xa4] ss:$16 sps:$4 sm:$0xff]   ;;  %v1725_v11 = vld [vmem:[#allocation2 + $0xa0] ss:$16 sps:$4 sm:$0xff]   ;;  %v1761_v20 = vld [vmem:[#allocation2 + $0x28] ss:$16 sps:$4 sm:$0xff]   ;;  %534 = vmatprep.subr.bf16.mxu1 %v1759_v19 }
  0x3e   :  { %494 = vmatpush1.bf16.msra.mxu0 %v1713_v3  ;;  %v1726_v12 = vld [vmem:[#allocation2 + $0xc4] ss:$16 sps:$4 sm:$0xff]   ;;  %v1728_v14 = vld [vmem:[#allocation2 + $0xc0] ss:$16 sps:$4 sm:$0xff]   ;;  %523 = vmatprep.mubr.bf16.mxu0 %v84_v18  ;;  %v1762_v21 = vld [vmem:[#allocation2 + $0x4c] ss:$16 sps:$4 sm:$0xff]  }
  0x3f   :  { %495 = vmatprep.subr.bf16.mxu0 %v1714_v4  ;;  %v1729_v17 = vld [vmem:[#allocation2 + $0xe4] ss:$16 sps:$4 sm:$0xff]   ;;  %564 = vmatprep.mubr.bf16.mxu1 %v84_v18  ;;  %v1731_v22 = vld [vmem:[#allocation2 + $0xe0] ss:$16 sps:$4 sm:$0xff]   ;;  %v1764_v24 = vld [vmem:[#allocation2 + $0x48] ss:$16 sps:$4 sm:$0xff]  }
  0x40   :  { %v1732_v23 = vld [vmem:[#allocation2 + $0x104] ss:$16 sps:$4 sm:$0xff]   ;;  %535 = vmatpush1.bf16.msra.mxu1 %v1761_v20  ;;  %v1765_v25 = vld [vmem:[#allocation2 + $0x6c] ss:$16 sps:$4 sm:$0xff]   ;;  %v1734_v26 = vld [vmem:[#allocation2 + $0x100] ss:$16 sps:$4 sm:$0xff]  }
  0x41   :  { %536 = vmatprep.subr.bf16.mxu1 %v1762_v21  ;;  %v1735_v27 = vld [vmem:[#allocation2 + $0x124] ss:$16 sps:$4 sm:$0xff]   ;;  %v1767_v28 = vld [vmem:[#allocation2 + $0x68] ss:$16 sps:$4 sm:$0xff]   ;;  %v1768_v29 = vld [vmem:[#allocation2 + $0x8c] ss:$16 sps:$4 sm:$0xff]  }
  0x42   :  { %496 = vmatpush1.bf16.msra.mxu0 %v1716_v5  ;;  %v1737_v30 = vld [vmem:[#allocation2 + $0x120] ss:$16 sps:$4 sm:$0xff]   ;;  %v1738_v31 = vld [vmem:[#allocation2 + $0x144] ss:$16 sps:$4 sm:$0xff]   ;;  %v1770_v32 = vld [vmem:[#allocation2 + $0x88] ss:$16 sps:$4 sm:$0xff]  }
  0x43   :  { %497 = vmatprep.subr.bf16.mxu0 %v1717_v6  ;;  %v1771_v33 = vld [vmem:[#allocation2 + $0xac] ss:$16 sps:$4 sm:$0xff]   ;;  %v1740_v34 = vld [vmem:[#allocation2 + $0x140] ss:$16 sps:$4 sm:$0xff]   ;;  %v1741_v35 = vld [vmem:[#allocation2 + $0x164] ss:$16 sps:$4 sm:$0xff]  }
  0x44   :  { %537 = vmatpush1.bf16.msra.mxu1 %v1764_v24  ;;  %v1773_v36 = vld [vmem:[#allocation2 + $0xa8] ss:$16 sps:$4 sm:$0xff]   ;;  %v1774_v37 = vld [vmem:[#allocation2 + $0xcc] ss:$16 sps:$4 sm:$0xff]   ;;  %v1743_v38 = vld [vmem:[#allocation2 + $0x160] ss:$16 sps:$4 sm:$0xff]  }
  0x45   :  { %538 = vmatprep.subr.bf16.mxu1 %v1765_v25  ;;  %v1744_v39 = vld [vmem:[#allocation2 + $0x184] ss:$16 sps:$4 sm:$0xff]   ;;  %v1776_v40 = vld [vmem:[#allocation2 + $0xc8] ss:$16 sps:$4 sm:$0xff]   ;;  %v1777_v41 = vld [vmem:[#allocation2 + $0xec] ss:$16 sps:$4 sm:$0xff]  }
  0x46   :  { %498 = vmatpush1.bf16.msra.mxu0 %v1719_v7  ;;  %v1746_v42 = vld [vmem:[#allocation2 + $0x180] ss:$16 sps:$4 sm:$0xff]   ;;  %v1747_v43 = vld [vmem:[#allocation2 + $0x1a4] ss:$16 sps:$4 sm:$0xff]   ;;  %v1779_v44 = vld [vmem:[#allocation2 + $0xe8] ss:$16 sps:$4 sm:$0xff]  }
  0x47   :  { %499 = vmatprep.subr.bf16.mxu0 %v1720_v8  ;;  %v1780_v45 = vld [vmem:[#allocation2 + $0x10c] ss:$16 sps:$4 sm:$0xff]   ;;  %v1749_v46 = vld [vmem:[#allocation2 + $0x1a0] ss:$16 sps:$4 sm:$0xff]   ;;  %v1750_v47 = vld [vmem:[#allocation2 + $0x1c4] ss:$16 sps:$4 sm:$0xff]  }
  0x48   :  { %539 = vmatpush1.bf16.msra.mxu1 %v1767_v28  ;;  %v1782_v48 = vld [vmem:[#allocation2 + $0x108] ss:$16 sps:$4 sm:$0xff]   ;;  %v1783_v49 = vld [vmem:[#allocation2 + $0x12c] ss:$16 sps:$4 sm:$0xff]   ;;  %v1752_v50 = vld [vmem:[#allocation2 + $0x1c0] ss:$16 sps:$4 sm:$0xff]  }
  0x49   :  { %540 = vmatprep.subr.bf16.mxu1 %v1768_v29  ;;  %v1753_v51 = vld [vmem:[#allocation2 + $0x1e4] ss:$16 sps:$4 sm:$0xff]   ;;  %v1785_v52 = vld [vmem:[#allocation2 + $0x128] ss:$16 sps:$4 sm:$0xff]   ;;  %v1786_v53 = vld [vmem:[#allocation2 + $0x14c] ss:$16 sps:$4 sm:$0xff]  }
  0x4a   :  { %500 = vmatpush1.bf16.msra.mxu0 %v1722_v9  ;;  %v1757_v54 = vld [vmem:[#allocation2 + $0x1e0] ss:$16 sps:$4 sm:$0xff]   ;;  %v1788_v56 = vld [vmem:[#allocation2 + $0x148] ss:$16 sps:$4 sm:$0xff]   ;;  %v1806_v57 = vld [vmem:[#allocation5 + $0x4] ss:$8 sps:$4 sm:$0xff]  }
  0x4b   :  { %501 = vmatprep.subr.bf16.mxu0 %v1723_v10  ;;  %v81_v55 = vld [vmem:[%s2223_s0] sm:$0xff]  ;;  %v1789_v58 = vld [vmem:[#allocation2 + $0x16c] ss:$16 sps:$4 sm:$0xff]   ;;  %v1791_v61 = vld [vmem:[#allocation2 + $0x168] ss:$16 sps:$4 sm:$0xff]   ;;  %vm1392_vm1 = vcmask 523264  }
  0x4c   :  { %541 = vmatpush1.bf16.msra.mxu1 %v1770_v32  ;;  %v1804_v59 = vld [vmem:[#allocation5] ss:$8 sps:$4 sm:$0xff]   ;;  %v83_v60 = vpack.c.bf16 %v81_v55, %v81_v55  ;;  %v1809_v62 = vld [vmem:[#allocation5 + $0x14] ss:$8 sps:$4 sm:$0xff]   ;;  %v1807_v0 = vld [vmem:[#allocation5 + $0x10] ss:$8 sps:$4 sm:$0xff]  }
  0x4d   :  { %542 = vmatprep.subr.bf16.mxu1 %v1771_v33  ;;  %v1792_v63 = vld [vmem:[#allocation2 + $0x18c] ss:$16 sps:$4 sm:$0xff]   ;;  %v1794_v1 = vld [vmem:[#allocation2 + $0x188] ss:$16 sps:$4 sm:$0xff]  }
  0x4e   :  { %502 = vmatpush1.bf16.msra.mxu0 %v1725_v11  ;;  %v1812_v2 = vld [vmem:[#allocation5 + $0x24] ss:$8 sps:$4 sm:$0xff]   ;;  %v1810_v4 = vld [vmem:[#allocation5 + $0x20] ss:$8 sps:$4 sm:$0xff]   ;;  %v1815_v6 = vld [vmem:[#allocation5 + $0x34] ss:$8 sps:$4 sm:$0xff]  }
  0x4f   :  { %503 = vmatprep.subr.bf16.mxu0 %v1726_v12  ;;  %v1795_v3 = vld [vmem:[#allocation2 + $0x1ac] ss:$16 sps:$4 sm:$0xff]   ;;  %v1797_v5 = vld [vmem:[#allocation2 + $0x1a8] ss:$16 sps:$4 sm:$0xff]  }
  0x50   :  { %543 = vmatpush1.bf16.msra.mxu1 %v1773_v36  ;;  %v1798_v7 = vld [vmem:[#allocation2 + $0x1cc] ss:$16 sps:$4 sm:$0xff]   ;;  %v1813_v8 = vld [vmem:[#allocation5 + $0x30] ss:$8 sps:$4 sm:$0xff]   ;;  %v1816_v12 = vld [vmem:[#allocation5 + $0x40] ss:$8 sps:$4 sm:$0xff]  }
  0x51   :  { %544 = vmatprep.subr.bf16.mxu1 %v1774_v37  ;;  %v1800_v9 = vld [vmem:[#allocation2 + $0x1c8] ss:$16 sps:$4 sm:$0xff]   ;;  %v1818_v10 = vld [vmem:[#allocation5 + $0x44] ss:$8 sps:$4 sm:$0xff]   ;;  %v1827_v18 = vld [vmem:[#allocation5 + $0x74] ss:$8 sps:$4 sm:$0xff]  }
  0x52   :  { %504 = vmatpush1.bf16.msra.mxu0 %v1728_v14  ;;  %v1801_v11 = vld [vmem:[#allocation2 + $0x1ec] ss:$16 sps:$4 sm:$0xff]   ;;  %v1803_v13 = vld [vmem:[#allocation2 + $0x1e8] ss:$16 sps:$4 sm:$0xff]   ;;  %v1900_v37 = vld [vmem:[#allocation7 + $0x40] sm:$0xff]  }
  0x53   :  { %505 = vmatprep.subr.bf16.mxu0 %v1729_v17  ;;  %v1821_v14 = vld [vmem:[#allocation5 + $0x54] ss:$8 sps:$4 sm:$0xff]   ;;  %v1819_v15 = vld [vmem:[#allocation5 + $0x50] ss:$8 sps:$4 sm:$0xff]   ;;  %v1824_v16 = vld [vmem:[#allocation5 + $0x64] ss:$8 sps:$4 sm:$0xff]  }
  0x54   :  { %545 = vmatpush1.bf16.msra.mxu1 %v1776_v40  ;;  %v1822_v17 = vld [vmem:[#allocation5 + $0x60] ss:$8 sps:$4 sm:$0xff]   ;;  %v1825_v19 = vld [vmem:[#allocation5 + $0x70] ss:$8 sps:$4 sm:$0xff]   ;;  %v1830_v20 = vld [vmem:[#allocation5 + $0x84] ss:$8 sps:$4 sm:$0xff]  }
  0x55   :  { %546 = vmatprep.subr.bf16.mxu1 %v1777_v41  ;;  %v1828_v21 = vld [vmem:[#allocation5 + $0x80] ss:$8 sps:$4 sm:$0xff]   ;;  %v1836_v24 = vld [vmem:[#allocation5 + $0xa4] ss:$8 sps:$4 sm:$0xff]   ;;  %v1904_v41 = vld [vmem:[#allocation7 + $0x50] sm:$0xff]  }
  0x56   :  { %506 = vmatpush1.bf16.msra.mxu0 %v1731_v22  ;;  %v1833_v22 = vld [vmem:[#allocation5 + $0x94] ss:$8 sps:$4 sm:$0xff]   ;;  %v1834_v25 = vld [vmem:[#allocation5 + $0xa0] ss:$8 sps:$4 sm:$0xff]   ;;  %v1842_v28 = vld [vmem:[#allocation5 + $0xc4] ss:$8 sps:$4 sm:$0xff]  }
  0x57   :  { %507 = vmatprep.subr.bf16.mxu0 %v1732_v23  ;;  %v1831_v23 = vld [vmem:[#allocation5 + $0x90] ss:$8 sps:$4 sm:$0xff]   ;;  %v1840_v29 = vld [vmem:[#allocation5 + $0xc0] ss:$8 sps:$4 sm:$0xff]   ;;  %v1848_v32 = vld [vmem:[#allocation5 + $0xe4] ss:$8 sps:$4 sm:$0xff]  }
  0x58   :  { %547 = vmatpush1.bf16.msra.mxu1 %v1779_v44  ;;  %v1846_v33 = vld [vmem:[#allocation5 + $0xe0] ss:$8 sps:$4 sm:$0xff]   ;;  %v1854_v36 = vld [vmem:[#allocation5 + $0x104] ss:$8 sps:$4 sm:$0xff]   ;;  %v1907_v44 = vld [vmem:[#allocation7 + $0x18] sm:$0xff]  }
  0x59   :  { %548 = vmatprep.subr.bf16.mxu1 %v1780_v45  ;;  %v1903_v40 = vld [vmem:[#allocation7 + $0x8] sm:$0xff]   ;;  %v1908_v45 = vld [vmem:[#allocation7 + $0x60] sm:$0xff]  }
  0x5a   :  { %508 = vmatpush1.bf16.msra.mxu0 %v1734_v26  ;;  %v1839_v26 = vld [vmem:[#allocation5 + $0xb4] ss:$8 sps:$4 sm:$0xff]  }
  0x5b   :  { %509 = vmatprep.subr.bf16.mxu0 %v1735_v27  ;;  %v1837_v27 = vld [vmem:[#allocation5 + $0xb0] ss:$8 sps:$4 sm:$0xff]  }
  0x5c   :  { %549 = vmatpush1.bf16.msra.mxu1 %v1782_v48  ;;  %v1911_v48 = vld [vmem:[#allocation7 + $0x28] sm:$0xff]  }
  0x5d   :  { %550 = vmatprep.subr.bf16.mxu1 %v1783_v49  ;;  %v151_v49 = vlaneseq }
  0x5e   :  { %510 = vmatpush1.bf16.msra.mxu0 %v1737_v30  ;;  %v1845_v30 = vld [vmem:[#allocation5 + $0xd4] ss:$8 sps:$4 sm:$0xff]  }
  0x5f   :  { %511 = vmatprep.subr.bf16.mxu0 %v1738_v31  ;;  %v1843_v31 = vld [vmem:[#allocation5 + $0xd0] ss:$8 sps:$4 sm:$0xff]  }
  0x60   :  { %551 = vmatpush1.bf16.msra.mxu1 %v1785_v52  ;;  %v2146_v52 = vld [vmem:[%s2225_s2] sm:$0xf] }
  0x61   :  { %552 = vmatprep.subr.bf16.mxu1 %v1786_v53 }
  0x62   :  { %512 = vmatpush1.bf16.msra.mxu0 %v1740_v34  ;;  %v1851_v34 = vld [vmem:[#allocation5 + $0xf4] ss:$8 sps:$4 sm:$0xff]  }
  0x63   :  { %513 = vmatprep.subr.bf16.mxu0 %v1741_v35  ;;  %v1849_v35 = vld [vmem:[#allocation5 + $0xf0] ss:$8 sps:$4 sm:$0xff]  }
  0x64   :  { %553 = vmatpush1.bf16.msra.mxu1 %v1788_v56 }
  0x65   :  { %554 = vmatprep.subr.bf16.mxu1 %v1789_v58 }
  0x66   :  { %514 = vmatpush1.bf16.msra.mxu0 %v1743_v38  ;;  %v1901_v38 = vld [vmem:[#allocation7] sm:$0xff]  }
  0x67   :  { %515 = vmatprep.subr.bf16.mxu0 %v1744_v39  ;;  %v1902_v39 = vld [vmem:[#allocation7 + $0x48] sm:$0xff]  }
  0x68   :  { %555 = vmatpush1.bf16.msra.mxu1 %v1791_v61 }
  0x69   :  { %556 = vmatprep.subr.bf16.mxu1 %v1792_v63 }
  0x6a   :  { %516 = vmatpush1.bf16.msra.mxu0 %v1746_v42  ;;  %v1905_v42 = vld [vmem:[#allocation7 + $0x10] sm:$0xff]  }
  0x6b   :  { %517 = vmatprep.subr.bf16.mxu0 %v1747_v43  ;;  %v1906_v43 = vld [vmem:[#allocation7 + $0x58] sm:$0xff]  }
  0x6c   :  { %557 = vmatpush1.bf16.msra.mxu1 %v1794_v1  ;;  %v1852_v1 = vld [vmem:[#allocation5 + $0x100] ss:$8 sps:$4 sm:$0xff]  }
  0x6d   :  { %558 = vmatprep.subr.bf16.mxu1 %v1795_v3  ;;  %v1857_v3 = vld [vmem:[#allocation5 + $0x114] ss:$8 sps:$4 sm:$0xff]  }
  0x6e   :  { %518 = vmatpush1.bf16.msra.mxu0 %v1749_v46  ;;  %v1909_v46 = vld [vmem:[#allocation7 + $0x20] sm:$0xff]  }
  0x6f   :  { %519 = vmatprep.subr.bf16.mxu0 %v1750_v47  ;;  %v1910_v47 = vld [vmem:[#allocation7 + $0x68] sm:$0xff]  }
  0x70   :  { %559 = vmatpush1.bf16.msra.mxu1 %v1797_v5  ;;  %v1860_v5 = vld [vmem:[#allocation5 + $0x124] ss:$8 sps:$4 sm:$0xff]  }
  0x71   :  { %560 = vmatprep.subr.bf16.mxu1 %v1798_v7  ;;  %v1863_v7 = vld [vmem:[#allocation5 + $0x134] ss:$8 sps:$4 sm:$0xff]  }
  0x72   :  { %520 = vmatpush1.bf16.msra.mxu0 %v1752_v50  ;;  %v2140_v50 = vshrl.u32 %v151_v49, 7  ;;  %v1914_v49 = vld [vmem:[#allocation7 + $0x78] sm:$0xff]  }
  0x73   :  { %521 = vmatprep.subr.bf16.mxu0 %v1753_v51 }
  0x74   :  { %561 = vmatpush1.bf16.msra.mxu1 %v1800_v9  ;;  %v153_v51 = vsub.s32 0, %v2140_v50  ;;  %v157_v53 = vsub.s32 1, %v2140_v50  ;;  %v1861_v9 = vld [vmem:[#allocation5 + $0x130] ss:$8 sps:$4 sm:$0xff]  }
  0x75   :  { %562 = vmatprep.subr.bf16.mxu1 %v1801_v11 }
  0x76   :  { %522 = vmatpush1.bf16.msra.mxu0 %v1757_v54  ;;  %v154_v54 = vrot.slane %v2146_v52, %v153_v51  ;;  %v158_v55 = vrot.slane %v2146_v52, %v157_v53 }
  0x77   :  { %977 = vmatprep.subr.bf16.mxu0 %v1806_v57 }
  0x78   :  { %563 = vmatpush1.bf16.msra.mxu1 %v1803_v13  ;;  %v1864_v13 = vld [vmem:[#allocation5 + $0x140] ss:$8 sps:$4 sm:$0xff]  }
  0x79   :  { %524 = vmatmul.mubr.bf16.vlgmr.msra.gmra.mrb[0].mxu0 %v83_v60  ;;  %1622 = vmatprep.subr.bf16.mxu1 %v1900_v37  ;;  %v1893_v37 = vld [vmem:[#allocation5 + $0x1d4] ss:$8 sps:$4 sm:$0xff]  }
  0x7a   :  { %978 = vmatpush1.bf16.msra.mxu0 %v1804_v59 }
  0x7b   :  { %979 = vmatprep.subr.bf16.mxu0 %v1809_v62  ;;  %565 = vmatmul.mubr.bf16.vlgmr.msra.gmra.mrb[0].mxu1 %v83_v60 }
  0x7c   :  { %1623 = vmatpush3.bf16.msra.mxu1 %v1901_v38  ;;  %v1891_v38 = vld [vmem:[#allocation5 + $0x1d0] ss:$8 sps:$4 sm:$0xff]  }
  0x7d   :  { %1624 = vmatprep.subr.bf16.mxu1 %v1902_v39 }
  0x7e   :  { %980 = vmatpush1.bf16.msra.mxu0 %v1807_v0 }
  0x7f   :  { %981 = vmatprep.subr.bf16.mxu0 %v1812_v2 }
  0x80   :  { %1625 = vmatpush3.bf16.msra.mxu1 %v1903_v40  ;;  %v1896_v40 = vld [vmem:[#allocation5 + $0x1e4] ss:$8 sps:$4 sm:$0xff]  }
  0x81   :  { %1626 = vmatprep.subr.bf16.mxu1 %v1904_v41  ;;  %v1894_v41 = vld [vmem:[#allocation5 + $0x1e0] ss:$8 sps:$4 sm:$0xff]  }
  0x82   :  { %982 = vmatpush1.bf16.msra.mxu0 %v1810_v4  ;;  %v1855_v4 = vld [vmem:[#allocation5 + $0x110] ss:$8 sps:$4 sm:$0xff]  }
  0x83   :  { %983 = vmatprep.subr.bf16.mxu0 %v1815_v6  ;;  %v1858_v6 = vld [vmem:[#allocation5 + $0x120] ss:$8 sps:$4 sm:$0xff]  }
  0x84   :  { %1627 = vmatpush3.bf16.msra.mxu1 %v1905_v42 }
  0x85   :  { %1628 = vmatprep.subr.bf16.mxu1 %v1906_v43  ;;  %v1899_v43 = vld [vmem:[#allocation5 + $0x1f4] ss:$8 sps:$4 sm:$0xff]  }
  0x86   :  { %984 = vmatpush1.bf16.msra.mxu0 %v1813_v8  ;;  %v165_v8 = vsub.s32 3, %v2140_v50 }
  0x87   :  { %985 = vmatprep.subr.bf16.mxu0 %v1818_v10  ;;  %v1866_v10 = vld [vmem:[#allocation5 + $0x144] ss:$8 sps:$4 sm:$0xff]  }
  0x88   :  { %1629 = vmatpush3.bf16.msra.mxu1 %v1907_v44  ;;  %v166_v11 = vrot.slane %v2146_v52, %v165_v8  ;;  %v1897_v44 = vld [vmem:[#allocation5 + $0x1f0] ss:$8 sps:$4 sm:$0xff]  }
  0x89   :  { %1630 = vmatprep.subr.bf16.mxu1 %v1908_v45  ;;  %v1923_v8 = vld [vmem:[%s2230_s7 + $0x38] sm:$0xff]  }
  0x8a   :  { %986 = vmatpush1.bf16.msra.mxu0 %v1816_v12 }
  0x8b   :  { %987 = vmatprep.subr.bf16.mxu0 %v1821_v14 }
  0x8c   :  { %1631 = vmatpush3.bf16.msra.mxu1 %v1909_v46 }
  0x8d   :  { %1632 = vmatprep.subr.bf16.mxu1 %v1910_v47  ;;  %v1912_v47 = vld [vmem:[#allocation7 + $0x70] sm:$0xff]  }
  0x8e   :  { %988 = vmatpush1.bf16.msra.mxu0 %v1819_v15  ;;  %v1869_v15 = vld [vmem:[#allocation5 + $0x154] ss:$8 sps:$4 sm:$0xff]  }
  0x8f   :  { %989 = vmatprep.subr.bf16.mxu0 %v1824_v16 }
  0x90   :  { %1633 = vmatpush3.bf16.msra.mxu1 %v1911_v48  ;;  %v1913_v48 = vld [vmem:[#allocation7 + $0x30] sm:$0xff]  }
  0x91   :  { %1634 = vmatprep.subr.bf16.mxu1 %v1912_v47 }
  0x92   :  { %990 = vmatpush1.bf16.msra.mxu0 %v1822_v17 }
  0x93   :  { %991 = vmatprep.subr.bf16.mxu0 %v1827_v18 }
  0x94   :  { %1635 = vmatpush3.bf16.msra.mxu1 %v1913_v48 }
  0x95   :  { %1636 = vmatprep.subr.bf16.mxu1 %v1914_v49 }
  0x96   :  { %992 = vmatpush1.bf16.msra.mxu0 %v1825_v19 }
  0x97   :  { %993 = vmatprep.subr.bf16.mxu0 %v1830_v20  ;;  %v1867_v20 = vld [vmem:[#allocation5 + $0x150] ss:$8 sps:$4 sm:$0xff]  }
  0x9a   :  { %994 = vmatpush1.bf16.msra.mxu0 %v1828_v21  ;;  %v1872_v21 = vld [vmem:[#allocation5 + $0x164] ss:$8 sps:$4 sm:$0xff]  }
  0x9b   :  { %995 = vmatprep.subr.bf16.mxu0 %v1833_v22 }
  0x9e   :  { %996 = vmatpush1.bf16.msra.mxu0 %v1831_v23  ;;  %v1870_v23 = vld [vmem:[#allocation5 + $0x160] ss:$8 sps:$4 sm:$0xff]  }
  0x9f   :  { %997 = vmatprep.subr.bf16.mxu0 %v1836_v24  ;;  %v1875_v24 = vld [vmem:[#allocation5 + $0x174] ss:$8 sps:$4 sm:$0xff]  }
  0xa2   :  { %998 = vmatpush1.bf16.msra.mxu0 %v1834_v25  ;;  %v1873_v25 = vld [vmem:[#allocation5 + $0x170] ss:$8 sps:$4 sm:$0xff]  }
  0xa3   :  { %999 = vmatprep.subr.bf16.mxu0 %v1839_v26  ;;  %v1878_v26 = vld [vmem:[#allocation5 + $0x184] ss:$8 sps:$4 sm:$0xff]  }
  0xa6   :  { %1000 = vmatpush1.bf16.msra.mxu0 %v1837_v27  ;;  %v1876_v27 = vld [vmem:[#allocation5 + $0x180] ss:$8 sps:$4 sm:$0xff]  }
  0xa7   :  { %1001 = vmatprep.subr.bf16.mxu0 %v1842_v28  ;;  %v1881_v28 = vld [vmem:[#allocation5 + $0x194] ss:$8 sps:$4 sm:$0xff]  }
  0xaa   :  { %1002 = vmatpush1.bf16.msra.mxu0 %v1840_v29  ;;  %v1879_v29 = vld [vmem:[#allocation5 + $0x190] ss:$8 sps:$4 sm:$0xff]  }
  0xab   :  { %1003 = vmatprep.subr.bf16.mxu0 %v1845_v30  ;;  %v1884_v30 = vld [vmem:[#allocation5 + $0x1a4] ss:$8 sps:$4 sm:$0xff]  }
  0xae   :  { %1004 = vmatpush1.bf16.msra.mxu0 %v1843_v31  ;;  %v1882_v31 = vld [vmem:[#allocation5 + $0x1a0] ss:$8 sps:$4 sm:$0xff]  }
  0xaf   :  { %1005 = vmatprep.subr.bf16.mxu0 %v1848_v32  ;;  %v1887_v32 = vld [vmem:[#allocation5 + $0x1b4] ss:$8 sps:$4 sm:$0xff]  }
  0xb2   :  { %1006 = vmatpush1.bf16.msra.mxu0 %v1846_v33  ;;  %v1885_v33 = vld [vmem:[#allocation5 + $0x1b0] ss:$8 sps:$4 sm:$0xff]  }
  0xb3   :  { %1007 = vmatprep.subr.bf16.mxu0 %v1851_v34  ;;  %v1890_v34 = vld [vmem:[#allocation5 + $0x1c4] ss:$8 sps:$4 sm:$0xff]  }
  0xb6   :  { %1008 = vmatpush1.bf16.msra.mxu0 %v1849_v35  ;;  %v1888_v35 = vld [vmem:[#allocation5 + $0x1c0] ss:$8 sps:$4 sm:$0xff]  }
  0xb7   :  { %1018 = vmatprep.subr.bf16.mxu0 %v1854_v36  ;;  %v161_v36 = vsub.s32 2, %v2140_v50  ;;  %v1917_v50 = vld [vmem:[%s2230_s7 + $0x8] sm:$0xff]  }
  0xb9   :  { %v162_v39 = vrot.slane %v2146_v52, %v161_v36  ;;  %v1915_v52 = vld [vmem:[#allocation7 + $0x38] sm:$0xff]  }
  0xba   :  { %1637 = vmatpush3.bf16.msra.mxu1 %v1915_v52 }
 0x14c   :  { %v525_v56 = vpop.f32.mrb[0].mxu0 }
 0x14d   :  { %v526_v57 = vadd.f32 %v525_v56, %v154_v54  ;;  %v527_v58 = vpop.f32.mrb[1].mxu0  ;;  %v2035_v54 = vmov 0.0  }
 0x14e   :  { %v528_v59 = vadd.f32 %v527_v58, %v158_v55  ;;  %v529_v60 = vpop.f32.mrb[2].mxu0  ;;  %v566_v12 = vpop.f32.mrb[0].mxu1  ;;  %1658 = vmatprep.subr.bf16.mxu1 %v2035_v54  ;;  %v645_v55 = vld [vmem:[%s2227_s4] sm:$0x3] }
 0x14f   :  { %v573_v61 = vmax.f32 %v526_v57, 0.0  ;;  %v530_v62 = vpop.f32.mrb[3].mxu0  ;;  %v568_v14 = vpop.f32.mrb[1].mxu1  ;;  %v567_v42 = vadd.f32 %v566_v12, %v162_v39  ;;  %v650_v56 = vrot.slane %v645_v55, %v153_v51  ;;  %v654_v57 = vrot.slane %v645_v55, %v157_v53  ;;  %v1918_v51 = vld [vmem:[%s2230_s7 + $0x10] sm:$0xff]   ;;  %v1919_v53 = vld [vmem:[%s2230_s7 + $0x18] sm:$0xff]  }
 0x150   :  { %v574_v63 = vmax.f32 %v528_v59, 0.0  ;;  %v569_v16 = vadd.f32 %v568_v14, %v166_v11  ;;  %v570_v17 = vpop.f32.mrb[2].mxu1 }
 0x151   :  { %v577_v2 = vpack.c.bf16 %v573_v61, %v573_v61  ;;  %v571_v18 = vpop.f32.mrb[3].mxu1  ;;  %v575_v45 = vmax.f32 %v567_v42, 0.0  ;;  %v1924_v17 = vld [vmem:[%s2232_s9] sm:$0xff]  }
 0x152   :  { %v578_v0 = vpack.c.bf16 %v574_v63, %v574_v63  ;;  %v576_v19 = vmax.f32 %v569_v16, 0.0 }
 0x153   :  { %v579_v46 = vpack.c.bf16 %v575_v45, %v575_v45 }
 0x154   :  { %1009 = vmatprep.mubr.bf16.mxu0 %v578_v0  ;;  %v580_v22 = vpack.c.bf16 %v576_v19, %v576_v19  ;;  %v1925_v19 = vld [vmem:[%s2232_s9 + $0x8] sm:$0xff]  }
 0x155   :  { %1010 = vmatmul.mubr.bf16.vlgmr.msra.gmra.mrb[4].mxu0 %v577_v2 }
 0x156   :  { %1019 = vmatpush1.bf16.msra.mxu0 %v1852_v1  ;;  %1050 = vmatprep.mubr.bf16.mxu0 %v580_v22  ;;  %v1607_v22 = vld [vmem:[%s2231_s8] ss:$0 sm:$0xff]  ;;  %s2037_s8 = smov [#allocation8]  }
 0x157   :  { %1020 = vmatprep.subr.bf16.mxu0 %v1857_v3  ;;  %v1916_v3 = vld [vmem:[%s2230_s7] sm:$0xff]  }
 0x15a   :  { %1021 = vmatpush1.bf16.msra.mxu0 %v1855_v4 }
 0x15b   :  { %1022 = vmatprep.subr.bf16.mxu0 %v1860_v5  ;;  %v1920_v5 = vld [vmem:[%s2230_s7 + $0x20] sm:$0xff]  }
 0x15e   :  { %1023 = vmatpush1.bf16.msra.mxu0 %v1858_v6  ;;  %v1921_v6 = vld [vmem:[%s2230_s7 + $0x28] sm:$0xff]  }
 0x15f   :  { %1024 = vmatprep.subr.bf16.mxu0 %v1863_v7  ;;  %v1922_v7 = vld [vmem:[%s2230_s7 + $0x30] sm:$0xff]  }
 0x162   :  { %1025 = vmatpush1.bf16.msra.mxu0 %v1861_v9 }
 0x163   :  { %1026 = vmatprep.subr.bf16.mxu0 %v1866_v10  ;;  %v1590_v10 = vld [vmem:[%s2229_s6] ss:$0 sm:$0xff] }
 0x166   :  { %1027 = vmatpush1.bf16.msra.mxu0 %v1864_v13 }
 0x167   :  { %1028 = vmatprep.subr.bf16.mxu0 %v1869_v15 }
 0x16a   :  { %1029 = vmatpush1.bf16.msra.mxu0 %v1867_v20  ;;  %v1926_v20 = vld [vmem:[%s2232_s9 + $0x10] sm:$0xff]  }
 0x16b   :  { %1030 = vmatprep.subr.bf16.mxu0 %v1872_v21  ;;  %v1927_v21 = vld [vmem:[%s2232_s9 + $0x18] sm:$0xff]   ;;  %s1452_s9 = sshll.u32 %s2037_s8, 4  ;;  %s1453_s9 = int_to_ptr.vmem [resolvable:$true] %s1452_s9 }
 0x16c   :  { %p2003_p11 = scmp.lt.s32.totalorder %s1453_s9, %s1453_s9 }
 0x16e   :  { %1031 = vmatpush1.bf16.msra.mxu0 %v1870_v23 }
 0x16f   :  { %1032 = vmatprep.subr.bf16.mxu0 %v1875_v24 }
 0x172   :  { %1033 = vmatpush1.bf16.msra.mxu0 %v1873_v25 }
 0x173   :  { %1034 = vmatprep.subr.bf16.mxu0 %v1878_v26 }
 0x176   :  { %1035 = vmatpush1.bf16.msra.mxu0 %v1876_v27 }
 0x177   :  { %1036 = vmatprep.subr.bf16.mxu0 %v1881_v28 }
 0x17a   :  { %1037 = vmatpush1.bf16.msra.mxu0 %v1879_v29 }
 0x17b   :  { %1038 = vmatprep.subr.bf16.mxu0 %v1884_v30  ;;  %v1616_v30 = vld [vmem:[%s2233_s10] ss:$0 sm:$0xff]  ;;  %s1998_s10 = scalar_lea.vmem %s1453_s9, 128 }
 0x17c   :  { %p1999_p10 = scmp.ne.s32.totalorder %s1453_s9, %s1998_s10  ;;  %p2004_p12 = scmp.lt.s32.totalorder %s1998_s10, %s1998_s10 }
 0x17e   :  { %1039 = vmatpush1.bf16.msra.mxu0 %v1882_v31  ;;  %p2005_p13 = por %p2004_p12, %p2003_p11 }
 0x17f   :  { %1040 = vmatprep.subr.bf16.mxu0 %v1887_v32 }
 0x180   :  { %p2006_p0 = pnand %p2005_p13, %p1999_p10 }
 0x182   :  { %1041 = vmatpush1.bf16.msra.mxu0 %v1885_v33 }
 0x183   :  { %1042 = vmatprep.subr.bf16.mxu0 %v1890_v34 }
 0x186   :  { %1043 = vmatpush1.bf16.msra.mxu0 %v1888_v35 }
 0x187   :  { %1044 = vmatprep.subr.bf16.mxu0 %v1893_v37 }
 0x18a   :  { %1045 = vmatpush1.bf16.msra.mxu0 %v1891_v38 }
 0x18b   :  { %1046 = vmatprep.subr.bf16.mxu0 %v1896_v40 }
 0x18e   :  { %1047 = vmatpush1.bf16.msra.mxu0 %v1894_v41 }
 0x18f   :  { %1048 = vmatprep.subr.bf16.mxu0 %v1899_v43 }
 0x192   :  { %1049 = vmatpush1.bf16.msra.mxu0 %v1897_v44 }
 0x195   :  { %1051 = vmatmul.mubr.bf16.vlgmr.msra.gmra.mrb[4].mxu0 %v579_v46 }
 0x268   :  { %v1052_v58 = vpop.f32.mrb[4].mxu0 }
 0x269   :  { %v1690_v59 = vadd.f32 %v1052_v58, %v650_v56  ;;  %v1054_v60 = vpop.f32.mrb[5].mxu0 }
 0x26a   :  { %v1691_v61 = vadd.f32 %v1054_v60, %v654_v57  ;;  %v1056_v62 = vpop.f32.mrb[6].mxu0 }
 0x26b   :  { %v1059_v63 = vmax.f32 %v1690_v59, 0.0  ;;  %v1057_v0 = vpop.f32.mrb[7].mxu0 }
 0x26c   :  { %v1060_v1 = vmax.f32 %v1691_v61, 0.0 }
 0x26d   :  { %v1061_v4 = vpack.c.bf16 %v1059_v63, %v1059_v63 }
 0x26e   :  { %v1062_v2 = vpack.c.bf16 %v1060_v1, %v1060_v1 }
 0x270   :  { %1230 = vmatprep.mubr.bf16.mxu1 %v1062_v2 }
 0x271   :  { %1231 = vmatmul.mubr.bf16.vlgmr.msra.gmra.mrb[4].mxu1 %v1061_v4 }
 0x272   :  { %1659 = vmatpush3.bf16.msra.mxu1 %v1916_v3  ;;  %1674 = vmatprep.mubr.msk.bf16.mxu1 %vm2036_vm0, %v2035_v54 }
 0x273   :  { %1660 = vmatprep.subr.bf16.mxu1 %v2035_v54 }
 0x276   :  { %1661 = vmatpush3.bf16.msra.mxu1 %v1917_v50 }
 0x277   :  { %1662 = vmatprep.subr.bf16.mxu1 %v2035_v54 }
 0x27a   :  { %1663 = vmatpush3.bf16.msra.mxu1 %v1918_v51 }
 0x27b   :  { %1664 = vmatprep.subr.bf16.mxu1 %v2035_v54 }
 0x27e   :  { %1665 = vmatpush3.bf16.msra.mxu1 %v1919_v53 }
 0x27f   :  { %1666 = vmatprep.subr.bf16.mxu1 %v2035_v54 }
 0x282   :  { %1667 = vmatpush3.bf16.msra.mxu1 %v1920_v5 }
 0x283   :  { %1668 = vmatprep.subr.bf16.mxu1 %v2035_v54 }
 0x286   :  { %1669 = vmatpush3.bf16.msra.mxu1 %v1921_v6 }
 0x287   :  { %1670 = vmatprep.subr.bf16.mxu1 %v2035_v54 }
 0x28a   :  { %1671 = vmatpush3.bf16.msra.mxu1 %v1922_v7 }
 0x28b   :  { %1672 = vmatprep.subr.bf16.mxu1 %v2035_v54 }
 0x28e   :  { %1673 = vmatpush3.bf16.msra.mxu1 %v1923_v8 }
 0x28f   :  { %1678 = vmatprep.subr.bf16.mxu1 %v2035_v54 }
 0x344   :  { %v1638_v9 = vpop.f32.mrb[4].mxu1 }
 0x345   :  { %v1639_v11 = vpop.f32.mrb[5].mxu1 }
 0x346   :  { %v1640_v12 = vadd.f32 %v1639_v11, %v1638_v9  ;;  %v1641_v13 = vpop.f32.mrb[6].mxu1 }
 0x347   :  { %v1642_v14 = vpop.f32.mrb[7].mxu1 }
 0x348   :  { %v1233_v15 = vadd.f32 %v1640_v12, %v1590_v10 }
 0x34a   :  { %v1238_v16 = vmax.f32 %v1233_v15, 0.0 }
 0x34c   :  { %v1239_v18 = vpack.c.bf16 %v1238_v16, %v1238_v16 }
 0x34e   :  { %1675 = vmatmul.mubr.bf16.vlgmr.msra.gmra.mrb[8].mxu1 %v1239_v18 }
 0x34f   :  { %1679 = vmatpush3.bf16.msra.mxu1 %v1924_v17  ;;  %1686 = vmatprep.mubr.msk.bf16.mxu1 %vm2036_vm0, %v2035_v54 }
 0x350   :  { %1680 = vmatprep.subr.bf16.mxu1 %v2035_v54 }
 0x353   :  { %1681 = vmatpush3.bf16.msra.mxu1 %v1925_v19 }
 0x354   :  { %1682 = vmatprep.subr.bf16.mxu1 %v2035_v54 }
 0x357   :  { %1683 = vmatpush3.bf16.msra.mxu1 %v1926_v20 }
 0x358   :  { %1684 = vmatprep.subr.bf16.mxu1 %v2035_v54 }
 0x35b   :  { %1685 = vmatpush3.bf16.msra.mxu1 %v1927_v21 }
 0x421   :  { %v1345_v23 = vpop.f32.mrb[8].mxu1 }
 0x422   :  { %v1346_v24 = vadd.f32 %v1607_v22, %v1345_v23  ;;  %v1676_v25 = vpop.f32.mrb[9].mxu1 }
 0x423   :  { %v1348_v26 = vpop.f32.mrb[10].mxu1 }
 0x424   :  { %v1351_v27 = vmax.f32 %v1346_v24, 0.0  ;;  %v1677_v28 = vpop.f32.mrb[11].mxu1 }
 0x426   :  { %v1352_v29 = vpack.c.bf16 %v1351_v27, %v1351_v27 }
 0x428   :  { %1687 = vmatmul.mubr.msk.bf16.vlgmr.msra.gmra.mrb[12].mxu1 %vm1392_vm1, %v1352_v29 }
 0x4fb   :  { %v1430_v31 = vpop.f32.mrb[12].mxu1 }
 0x4fc   :  { %v1431_v32 = vadd.f32 %v1616_v30, %v1430_v31  ;;  %v1688_v33 = vpop.f32.mrb[13].mxu1 }
 0x4fd   :  { %v1433_v34 = vpop.f32.mrb[14].mxu1 }
 0x4fe   :  { %1436 = vmax.xlane.f32.xlu0 %v1431_v32  ;;  %v1689_v35 = vpop.f32.mrb[15].mxu1 }
 0x58b   :  { %v1437_v36 = vpop.xlane.xlu0 %1436 }
 0x58c   :  { %v1438_v37 = vsub.f32 %v1431_v32, %v1437_v36 }
 0x58e   :  { %v1439_v38 = vmul.f32 1.442695, %v1438_v37 }
 0x590   :  { %1928 = vpow2.f32 %v1439_v38 }
 0x59a   :  { %v1929_v39 = vpop.eup %1928 }
 0x59b   :  { %1441 = vadd.xlane.f32.xlu0 %v1929_v39 }
 0x628   :  { %v1442_v40 = vpop.xlane.xlu0 %1441 }
 0x629   :  { %1930 = vrcp.f32 %v1442_v40 }
 0x633   :  { %v1931_v41 = vpop.eup %1930 }
 0x634   :  { %v1444_v42 = vmul.f32 %v1931_v41, %v1929_v39 }
 0x636   :  { %1445 = vst [vmem:[#allocation8] sm:$0xff] %v1444_v42 }
 0x637   :  { %2009 = shalt.err (!%p2006_p0)
}
 0x638   :  { %s2010_s27 = scalar_lea.hbm %s2234_s11, 128 }
 0x639   :  { %p2011_p1 = scmp.ne.s32.totalorder %s2234_s11, %s2010_s27  ;;  %p2014_p2 = scmp.lt.u32.totalorder %s2010_s27, %s2234_s11 }
 0x63b   :  { %p2016_p3 = pnand %p2014_p2, %p2011_p1 }
 0x63d   :  { %2019 = shalt.err (!%p2016_p3)
}
 0x63e   :  { %1455 = dma.vmem_to_hbm [thread:$0]  %s1453_s9, 128, %s2234_s11, [#allocation4]  }
 0x63f   :  { %2024 = dma.done.wait [#allocation4], 128  }
 0x640   :  { %2025 = vsyncadd [#allocation4], 4294967168 }
 0x641   :  { %1459 = vsyncpa [#allocation3], 1 }
 0x642   :  { %1460 = vsyncpa [#allocation6], 1 }
 0x643   :  { %1461 = vsyncpa [#allocation4], 1 }

</bundles_post_ra>
